<compile_context>
chip_gen: v7x
topology: tpu7x:2x2x1
jax: 0.10.0
libtpu: 0.0.40
codegen_flags: <defaults>
</compile_context>

<pallas_src>
import jax
import jax.numpy as jnp
from jax.experimental import pallas as pl
from jax.experimental.pallas import tpu as pltpu

DIM_U = 2
DIM_XC = 0
DIM_UE = DIM_XC + DIM_U   # 2 (output features)
DIM_X = 2
DIM_XE = DIM_X + DIM_XC   # 2 (input features)
HIDDEN = 8

LANES = 128                          # TPU lane width
SAMPLES_PER_ROW = LANES // DIM_XE    # 64 interleaved samples per 128-lane row

# The flat interleaved-layout trick relies on input and output having the same
# per-sample width (2 floats in, 2 floats out).
assert DIM_XE == DIM_UE == 2


def _round_up(n, m):
    return (n + m - 1) // m * m


def _snn_kernel(x_ref, w1_ref, b1_ref, w2_ref, b2_ref, o_ref):
    """One (TR, 128) block of interleaved samples -> interleaved outputs.

    x_ref : (TR, 128) f32 VMEM; lane 2i holds x0, lane 2i+1 holds x1 of sample i
    w1_ref: (8, 2)  f32 SMEM   (PyTorch (out, in) layout)
    b1_ref: (8,)    f32 SMEM
    w2_ref: (2, 8)  f32 SMEM
    b2_ref: (2,)    f32 SMEM
    o_ref : (TR, 128) f32 VMEM; lane 2i gets y0, lane 2i+1 gets y1 of sample i
    """
    xt = x_ref[...]

    lane = jax.lax.broadcasted_iota(jnp.int32, xt.shape, 1)
    even = (lane & 1) == 0            # even lanes = feature 0 / output row 0

    # Deinterleave: each lane needs its partner lane's value (lane ^ 1).  Both
    # neighbours come from XLU lane rotations (otherwise-idle XLU slot).  The
    # direction convention of pltpu.roll is checked at runtime against a tiny
    # iota so the kernel is correct under either sign convention; the rolls'
    # wrap-around lanes are never consumed (prv only on odd lanes, nxt only on
    # even lanes).
    r_a = pltpu.roll(xt, 1, axis=1)
    r_b = pltpu.roll(xt, LANES - 1, axis=1)
    probe = jax.lax.broadcasted_iota(jnp.int32, (8, LANES), 1)
    a_shifts_up = jnp.sum(
        (pltpu.roll(probe, 1, axis=1) == probe - 1).astype(jnp.int32)
    ) > (8 * LANES // 2)              # True iff roll(x, 1)[l] == x[l - 1]
    prv = jnp.where(a_shifts_up, r_a, r_b)    # prv[l] = xt[l - 1]
    nxt = jnp.where(a_shifts_up, r_b, r_a)    # nxt[l] = xt[l + 1]
    x0 = jnp.where(even, xt, prv)     # feature 0 of this lane's sample
    x1 = jnp.where(even, nxt, xt)     # feature 1 of this lane's sample

    # Fused layer-1 / tanh / layer-2 accumulation on fully dense tiles.
    # Weights are SMEM scalars splatted against (TR, 128) tiles; both biases
    # are folded into the accumulator inits; each hidden activation is consumed
    # immediately (keeps block-sized VMEM temporaries small).
    acc = jnp.where(even, b2_ref[0], b2_ref[1])       # start from output bias
    for j in range(HIDDEN):
        pre = x0 * w1_ref[j, 0] + (x1 * w1_ref[j, 1] + b1_ref[j])
        # tanh lowers to a single EUP op; if a bundle dump ever shows it
        # expanding into VALU polynomials, swap in
        #   1 - 2 * pl.reciprocal(jnp.exp(2 * pre) + 1, approx=True)
        h = jnp.tanh(pre)
        w2j = jnp.where(even, w2_ref[0, j], w2_ref[1, j])
        acc = acc + w2j * h
    o_ref[...] = acc.astype(o_ref.dtype)


def snn_forward(x, w1, b1, w2, b2, *, max_block_rows=2048, target_blocks=8):
    """x: (B, 2) f32; w1: (8, 2); b1: (8,); w2: (2, 8); b2: (2,) -> (B, 2).

    The (B, 2) array is consumed in place via a free flat (rows, 128) view; a
    copy only happens when padding to the block geometry is required.
    """
    B = x.shape[0]
    n = B * DIM_XE
    rows = _round_up(max(n, 1), LANES) // LANES

    # Row tile: multiple of 8 sublanes, derived from B so small batches do not
    # over-pad, capped at max_block_rows (1 MiB per block by default; the
    # double-buffered in/out blocks plus ~7 block-sized temporaries stay well
    # inside the explicit 32 MiB VMEM limit on v5e/v6e/v7x).
    tr = max(8, min(max_block_rows,
                    _round_up((rows + target_blocks - 1) // target_blocks, 8)))
    rows_pad = _round_up(rows, tr)
    total = rows_pad * LANES

    flat = x.reshape(-1)
    if total != n:                        # copies only for non-aligned batches
        flat = jnp.pad(flat, (0, total - n))
    xt = flat.reshape(rows_pad, LANES)

    out = pl.pallas_call(
        _snn_kernel,
        out_shape=jax.ShapeDtypeStruct((rows_pad, LANES), x.dtype),
        grid=(rows_pad // tr,),
        in_specs=[
            pl.BlockSpec((tr, LANES), lambda i: (i, 0)),         # streamed batch
            pl.BlockSpec(memory_space=pltpu.MemorySpace.SMEM),   # w1 (scalars)
            pl.BlockSpec(memory_space=pltpu.MemorySpace.SMEM),   # b1
            pl.BlockSpec(memory_space=pltpu.MemorySpace.SMEM),   # w2
            pl.BlockSpec(memory_space=pltpu.MemorySpace.SMEM),   # b2
        ],
        out_specs=pl.BlockSpec((tr, LANES), lambda i: (i, 0)),
        compiler_params=pltpu.CompilerParams(
            dimension_semantics=("parallel",),
            vmem_limit_bytes=32 * 1024 * 1024,
        ),
    )(xt, w1, b1, w2, b2)

    y_flat = out.reshape(-1)
    if total != n:
        y_flat = y_flat[:n]
    return y_flat.reshape(B, DIM_UE)


def init_params(key):
    """nn.Linear-style U(-1/sqrt(fan_in), 1/sqrt(fan_in)) init, PyTorch layout."""
    k1, k2, k3, k4 = jax.random.split(key, 4)
    bound1 = 1.0 / jnp.sqrt(DIM_XE)
    bound2 = 1.0 / jnp.sqrt(HIDDEN)
    w1 = jax.random.uniform(k1, (HIDDEN, DIM_XE), jnp.float32, -bound1, bound1)
    b1 = jax.random.uniform(k2, (HIDDEN,), jnp.float32, -bound1, bound1)
    w2 = jax.random.uniform(k3, (DIM_UE, HIDDEN), jnp.float32, -bound2, bound2)
    b2 = jax.random.uniform(k4, (DIM_UE,), jnp.float32, -bound2, bound2)
    return w1, b1, w2, b2


def snn_reference(x, w1, b1, w2, b2):
    return jnp.tanh(x @ w1.T + b1) @ w2.T + b2


if __name__ == "__main__":
    key = jax.random.PRNGKey(0)
    kx, kp = jax.random.split(key)
    w1, b1, w2, b2 = init_params(kp)

    # Small shape consistent with the module (2 input features), single block.
    batch = 8
    x = jax.random.normal(kx, (batch, DIM_XE), jnp.float32)
    out = jax.block_until_ready(snn_forward(x, w1, b1, w2, b2))
    ref = snn_reference(x, w1, b1, w2, b2)
    assert out.shape == (batch, DIM_UE)
    assert jnp.allclose(out, ref, atol=1e-5, rtol=1e-5)

    # Ragged batch exercising multiple grid steps + flat-tail padding.
    batch2 = 1000
    x2 = jax.random.normal(kx, (batch2, DIM_XE), jnp.float32)
    out2 = jax.block_until_ready(
        snn_forward(x2, w1, b1, w2, b2, max_block_rows=8, target_blocks=2))
    ref2 = snn_reference(x2, w1, b1, w2, b2)
    assert out2.shape == (batch2, DIM_UE)
    assert jnp.allclose(out2, ref2, atol=1e-5, rtol=1e-5)

    # Aligned batch on the default tiling (no pad copy, 8 "parallel" blocks).
    batch3 = 4096
    x3 = jax.random.normal(kx, (batch3, DIM_XE), jnp.float32)
    out3 = jax.block_until_ready(snn_forward(x3, w1, b1, w2, b2))
    ref3 = snn_reference(x3, w1, b1, w2, b2)
    assert out3.shape == (batch3, DIM_UE)
    assert jnp.allclose(out3, ref3, atol=1e-5, rtol=1e-5)

    print("KERNEL_OK")
</pallas_src>

<mosaic_0001>
module attributes {stable_mosaic.version = 11 : i64} {
  func.func @_snn_kernel(%arg0: i32, %arg1: memref<8x128xf32, #tpu.memory_space<vmem>>, %arg2: memref<8x2xf32, #tpu.memory_space<smem>>, %arg3: memref<8xf32, #tpu.memory_space<smem>>, %arg4: memref<2x8xf32, #tpu.memory_space<smem>>, %arg5: memref<2xf32, #tpu.memory_space<smem>>, %arg6: memref<8x128xf32, #tpu.memory_space<vmem>>) attributes {dimension_semantics = [#tpu.dimension_semantics<parallel>], iteration_bounds = array<i64: 1>, scalar_prefetch = 0 : i64, scratch_operands = 0 : i64, tpu.core_type = #tpu.core_type<tc>, window_params = [{transform_indices = @transform_0, window_bounds = array<i64: 8, 128>}, {transform_indices = @transform_1, window_bounds = array<i64: 8, 2>}, {transform_indices = @transform_2, window_bounds = array<i64: 8>}, {transform_indices = @transform_3, window_bounds = array<i64: 2, 8>}, {transform_indices = @transform_4, window_bounds = array<i64: 2>}, {transform_indices = @transform_5, window_bounds = array<i64: 8, 128>}]} {
    %c0 = arith.constant 0 : index
    %c0_0 = arith.constant 0 : index
    %0 = vector.load %arg1[%c0, %c0_0] : memref<8x128xf32, #tpu.memory_space<vmem>>, vector<8x128xf32>
    %1 = tpu.iota {dimensions = array<i32: 1>} : vector<8x128xi32>
    %c1_i32 = arith.constant 1 : i32
    %2 = vector.broadcast %c1_i32 : i32 to vector<8x128xi32>
    %3 = arith.andi %1, %2 : vector<8x128xi32>
    %c0_i32 = arith.constant 0 : i32
    %4 = vector.broadcast %c0_i32 : i32 to vector<8x128xi32>
    %5 = arith.cmpi eq, %3, %4 : vector<8x128xi32>
    %c1_i32_1 = arith.constant 1 : i32
    %6 = tpu.dynamic_rotate %0 by %c1_i32_1 dim 1 : vector<8x128xf32>, i32 -> vector<8x128xf32>
    %c127_i32 = arith.constant 127 : i32
    %7 = tpu.dynamic_rotate %0 by %c127_i32 dim 1 : vector<8x128xf32>, i32 -> vector<8x128xf32>
    %8 = tpu.iota {dimensions = array<i32: 1>} : vector<8x128xi32>
    %c1_i32_2 = arith.constant 1 : i32
    %9 = tpu.dynamic_rotate %8 by %c1_i32_2 dim 1 : vector<8x128xi32>, i32 -> vector<8x128xi32>
    %c1_i32_3 = arith.constant 1 : i32
    %10 = vector.broadcast %c1_i32_3 : i32 to vector<8x128xi32>
    %11 = arith.subi %8, %10 : vector<8x128xi32>
    %12 = arith.cmpi eq, %9, %11 : vector<8x128xi32>
    %13 = arith.extui %12 : vector<8x128xi1> to vector<8x128xi32>
    %14 = vector.shape_cast %13 : vector<8x128xi32> to vector<1x8x128xi32>
    %cst = arith.constant dense<0> : vector<1xi32>
    %15 = vector.multi_reduction <add>, %14, %cst [1, 2] : vector<1x8x128xi32> to vector<1xi32>
    %16 = vector.shape_cast %15 : vector<1xi32> to vector<1x1x1xi32>
    %17 = vector.extract %16[0, 0, 0] : i32 from vector<1x1x1xi32>
    %c512_i32 = arith.constant 512 : i32
    %18 = arith.cmpi sgt, %17, %c512_i32 : i32
    %19 = arith.select %18, %6, %7 : vector<8x128xf32>
    %20 = arith.select %18, %7, %6 : vector<8x128xf32>
    %21 = arith.select %5, %0, %19 : vector<8x128xi1>, vector<8x128xf32>
    %22 = arith.select %5, %20, %0 : vector<8x128xi1>, vector<8x128xf32>
    %c0_4 = arith.constant 0 : index
    %23 = memref.load %arg5[%c0_4] : memref<2xf32, #tpu.memory_space<smem>>
    %c1 = arith.constant 1 : index
    %24 = memref.load %arg5[%c1] : memref<2xf32, #tpu.memory_space<smem>>
    %25 = vector.broadcast %23 : f32 to vector<8x128xf32>
    %26 = vector.broadcast %24 : f32 to vector<8x128xf32>
    %27 = arith.select %5, %25, %26 : vector<8x128xi1>, vector<8x128xf32>
    %c0_5 = arith.constant 0 : index
    %c0_6 = arith.constant 0 : index
    %28 = memref.load %arg2[%c0_5, %c0_6] : memref<8x2xf32, #tpu.memory_space<smem>>
    %29 = vector.broadcast %28 : f32 to vector<8x128xf32>
    %30 = arith.mulf %21, %29 : vector<8x128xf32>
    %c0_7 = arith.constant 0 : index
    %c1_8 = arith.constant 1 : index
    %31 = memref.load %arg2[%c0_7, %c1_8] : memref<8x2xf32, #tpu.memory_space<smem>>
    %32 = vector.broadcast %31 : f32 to vector<8x128xf32>
    %33 = arith.mulf %22, %32 : vector<8x128xf32>
    %c0_9 = arith.constant 0 : index
    %34 = memref.load %arg3[%c0_9] : memref<8xf32, #tpu.memory_space<smem>>
    %35 = vector.broadcast %34 : f32 to vector<8x128xf32>
    %36 = arith.addf %33, %35 : vector<8x128xf32>
    %37 = arith.addf %30, %36 : vector<8x128xf32>
    %38 = math.tanh %37 : vector<8x128xf32>
    %c0_10 = arith.constant 0 : index
    %c0_11 = arith.constant 0 : index
    %39 = memref.load %arg4[%c0_10, %c0_11] : memref<2x8xf32, #tpu.memory_space<smem>>
    %c1_12 = arith.constant 1 : index
    %c0_13 = arith.constant 0 : index
    %40 = memref.load %arg4[%c1_12, %c0_13] : memref<2x8xf32, #tpu.memory_space<smem>>
    %41 = vector.broadcast %39 : f32 to vector<8x128xf32>
    %42 = vector.broadcast %40 : f32 to vector<8x128xf32>
    %43 = arith.select %5, %41, %42 : vector<8x128xi1>, vector<8x128xf32>
    %44 = arith.mulf %43, %38 : vector<8x128xf32>
    %45 = arith.addf %27, %44 : vector<8x128xf32>
    %c1_14 = arith.constant 1 : index
    %c0_15 = arith.constant 0 : index
    %46 = memref.load %arg2[%c1_14, %c0_15] : memref<8x2xf32, #tpu.memory_space<smem>>
    %47 = vector.broadcast %46 : f32 to vector<8x128xf32>
    %48 = arith.mulf %21, %47 : vector<8x128xf32>
    %c1_16 = arith.constant 1 : index
    %c1_17 = arith.constant 1 : index
    %49 = memref.load %arg2[%c1_16, %c1_17] : memref<8x2xf32, #tpu.memory_space<smem>>
    %50 = vector.broadcast %49 : f32 to vector<8x128xf32>
    %51 = arith.mulf %22, %50 : vector<8x128xf32>
    %c1_18 = arith.constant 1 : index
    %52 = memref.load %arg3[%c1_18] : memref<8xf32, #tpu.memory_space<smem>>
    %53 = vector.broadcast %52 : f32 to vector<8x128xf32>
    %54 = arith.addf %51, %53 : vector<8x128xf32>
    %55 = arith.addf %48, %54 : vector<8x128xf32>
    %56 = math.tanh %55 : vector<8x128xf32>
    %c0_19 = arith.constant 0 : index
    %c1_20 = arith.constant 1 : index
    %57 = memref.load %arg4[%c0_19, %c1_20] : memref<2x8xf32, #tpu.memory_space<smem>>
    %c1_21 = arith.constant 1 : index
    %c1_22 = arith.constant 1 : index
    %58 = memref.load %arg4[%c1_21, %c1_22] : memref<2x8xf32, #tpu.memory_space<smem>>
    %59 = vector.broadcast %57 : f32 to vector<8x128xf32>
    %60 = vector.broadcast %58 : f32 to vector<8x128xf32>
    %61 = arith.select %5, %59, %60 : vector<8x128xi1>, vector<8x128xf32>
    %62 = arith.mulf %61, %56 : vector<8x128xf32>
    %63 = arith.addf %45, %62 : vector<8x128xf32>
    %c2 = arith.constant 2 : index
    %c0_23 = arith.constant 0 : index
    %64 = memref.load %arg2[%c2, %c0_23] : memref<8x2xf32, #tpu.memory_space<smem>>
    %65 = vector.broadcast %64 : f32 to vector<8x128xf32>
    %66 = arith.mulf %21, %65 : vector<8x128xf32>
    %c2_24 = arith.constant 2 : index
    %c1_25 = arith.constant 1 : index
    %67 = memref.load %arg2[%c2_24, %c1_25] : memref<8x2xf32, #tpu.memory_space<smem>>
    %68 = vector.broadcast %67 : f32 to vector<8x128xf32>
    %69 = arith.mulf %22, %68 : vector<8x128xf32>
    %c2_26 = arith.constant 2 : index
    %70 = memref.load %arg3[%c2_26] : memref<8xf32, #tpu.memory_space<smem>>
    %71 = vector.broadcast %70 : f32 to vector<8x128xf32>
    %72 = arith.addf %69, %71 : vector<8x128xf32>
    %73 = arith.addf %66, %72 : vector<8x128xf32>
    %74 = math.tanh %73 : vector<8x128xf32>
    %c0_27 = arith.constant 0 : index
    %c2_28 = arith.constant 2 : index
    %75 = memref.load %arg4[%c0_27, %c2_28] : memref<2x8xf32, #tpu.memory_space<smem>>
    %c1_29 = arith.constant 1 : index
    %c2_30 = arith.constant 2 : index
    %76 = memref.load %arg4[%c1_29, %c2_30] : memref<2x8xf32, #tpu.memory_space<smem>>
    %77 = vector.broadcast %75 : f32 to vector<8x128xf32>
    %78 = vector.broadcast %76 : f32 to vector<8x128xf32>
    %79 = arith.select %5, %77, %78 : vector<8x128xi1>, vector<8x128xf32>
    %80 = arith.mulf %79, %74 : vector<8x128xf32>
    %81 = arith.addf %63, %80 : vector<8x128xf32>
    %c3 = arith.constant 3 : index
    %c0_31 = arith.constant 0 : index
    %82 = memref.load %arg2[%c3, %c0_31] : memref<8x2xf32, #tpu.memory_space<smem>>
    %83 = vector.broadcast %82 : f32 to vector<8x128xf32>
    %84 = arith.mulf %21, %83 : vector<8x128xf32>
    %c3_32 = arith.constant 3 : index
    %c1_33 = arith.constant 1 : index
    %85 = memref.load %arg2[%c3_32, %c1_33] : memref<8x2xf32, #tpu.memory_space<smem>>
    %86 = vector.broadcast %85 : f32 to vector<8x128xf32>
    %87 = arith.mulf %22, %86 : vector<8x128xf32>
    %c3_34 = arith.constant 3 : index
    %88 = memref.load %arg3[%c3_34] : memref<8xf32, #tpu.memory_space<smem>>
    %89 = vector.broadcast %88 : f32 to vector<8x128xf32>
    %90 = arith.addf %87, %89 : vector<8x128xf32>
    %91 = arith.addf %84, %90 : vector<8x128xf32>
    %92 = math.tanh %91 : vector<8x128xf32>
    %c0_35 = arith.constant 0 : index
    %c3_36 = arith.constant 3 : index
    %93 = memref.load %arg4[%c0_35, %c3_36] : memref<2x8xf32, #tpu.memory_space<smem>>
    %c1_37 = arith.constant 1 : index
    %c3_38 = arith.constant 3 : index
    %94 = memref.load %arg4[%c1_37, %c3_38] : memref<2x8xf32, #tpu.memory_space<smem>>
    %95 = vector.broadcast %93 : f32 to vector<8x128xf32>
    %96 = vector.broadcast %94 : f32 to vector<8x128xf32>
    %97 = arith.select %5, %95, %96 : vector<8x128xi1>, vector<8x128xf32>
    %98 = arith.mulf %97, %92 : vector<8x128xf32>
    %99 = arith.addf %81, %98 : vector<8x128xf32>
    %c4 = arith.constant 4 : index
    %c0_39 = arith.constant 0 : index
    %100 = memref.load %arg2[%c4, %c0_39] : memref<8x2xf32, #tpu.memory_space<smem>>
    %101 = vector.broadcast %100 : f32 to vector<8x128xf32>
    %102 = arith.mulf %21, %101 : vector<8x128xf32>
    %c4_40 = arith.constant 4 : index
    %c1_41 = arith.constant 1 : index
    %103 = memref.load %arg2[%c4_40, %c1_41] : memref<8x2xf32, #tpu.memory_space<smem>>
    %104 = vector.broadcast %103 : f32 to vector<8x128xf32>
    %105 = arith.mulf %22, %104 : vector<8x128xf32>
    %c4_42 = arith.constant 4 : index
    %106 = memref.load %arg3[%c4_42] : memref<8xf32, #tpu.memory_space<smem>>
    %107 = vector.broadcast %106 : f32 to vector<8x128xf32>
    %108 = arith.addf %105, %107 : vector<8x128xf32>
    %109 = arith.addf %102, %108 : vector<8x128xf32>
    %110 = math.tanh %109 : vector<8x128xf32>
    %c0_43 = arith.constant 0 : index
    %c4_44 = arith.constant 4 : index
    %111 = memref.load %arg4[%c0_43, %c4_44] : memref<2x8xf32, #tpu.memory_space<smem>>
    %c1_45 = arith.constant 1 : index
    %c4_46 = arith.constant 4 : index
    %112 = memref.load %arg4[%c1_45, %c4_46] : memref<2x8xf32, #tpu.memory_space<smem>>
    %113 = vector.broadcast %111 : f32 to vector<8x128xf32>
    %114 = vector.broadcast %112 : f32 to vector<8x128xf32>
    %115 = arith.select %5, %113, %114 : vector<8x128xi1>, vector<8x128xf32>
    %116 = arith.mulf %115, %110 : vector<8x128xf32>
    %117 = arith.addf %99, %116 : vector<8x128xf32>
    %c5 = arith.constant 5 : index
    %c0_47 = arith.constant 0 : index
    %118 = memref.load %arg2[%c5, %c0_47] : memref<8x2xf32, #tpu.memory_space<smem>>
    %119 = vector.broadcast %118 : f32 to vector<8x128xf32>
    %120 = arith.mulf %21, %119 : vector<8x128xf32>
    %c5_48 = arith.constant 5 : index
    %c1_49 = arith.constant 1 : index
    %121 = memref.load %arg2[%c5_48, %c1_49] : memref<8x2xf32, #tpu.memory_space<smem>>
    %122 = vector.broadcast %121 : f32 to vector<8x128xf32>
    %123 = arith.mulf %22, %122 : vector<8x128xf32>
    %c5_50 = arith.constant 5 : index
    %124 = memref.load %arg3[%c5_50] : memref<8xf32, #tpu.memory_space<smem>>
    %125 = vector.broadcast %124 : f32 to vector<8x128xf32>
    %126 = arith.addf %123, %125 : vector<8x128xf32>
    %127 = arith.addf %120, %126 : vector<8x128xf32>
    %128 = math.tanh %127 : vector<8x128xf32>
    %c0_51 = arith.constant 0 : index
    %c5_52 = arith.constant 5 : index
    %129 = memref.load %arg4[%c0_51, %c5_52] : memref<2x8xf32, #tpu.memory_space<smem>>
    %c1_53 = arith.constant 1 : index
    %c5_54 = arith.constant 5 : index
    %130 = memref.load %arg4[%c1_53, %c5_54] : memref<2x8xf32, #tpu.memory_space<smem>>
    %131 = vector.broadcast %129 : f32 to vector<8x128xf32>
    %132 = vector.broadcast %130 : f32 to vector<8x128xf32>
    %133 = arith.select %5, %131, %132 : vector<8x128xi1>, vector<8x128xf32>
    %134 = arith.mulf %133, %128 : vector<8x128xf32>
    %135 = arith.addf %117, %134 : vector<8x128xf32>
    %c6 = arith.constant 6 : index
    %c0_55 = arith.constant 0 : index
    %136 = memref.load %arg2[%c6, %c0_55] : memref<8x2xf32, #tpu.memory_space<smem>>
    %137 = vector.broadcast %136 : f32 to vector<8x128xf32>
    %138 = arith.mulf %21, %137 : vector<8x128xf32>
    %c6_56 = arith.constant 6 : index
    %c1_57 = arith.constant 1 : index
    %139 = memref.load %arg2[%c6_56, %c1_57] : memref<8x2xf32, #tpu.memory_space<smem>>
    %140 = vector.broadcast %139 : f32 to vector<8x128xf32>
    %141 = arith.mulf %22, %140 : vector<8x128xf32>
    %c6_58 = arith.constant 6 : index
    %142 = memref.load %arg3[%c6_58] : memref<8xf32, #tpu.memory_space<smem>>
    %143 = vector.broadcast %142 : f32 to vector<8x128xf32>
    %144 = arith.addf %141, %143 : vector<8x128xf32>
    %145 = arith.addf %138, %144 : vector<8x128xf32>
    %146 = math.tanh %145 : vector<8x128xf32>
    %c0_59 = arith.constant 0 : index
    %c6_60 = arith.constant 6 : index
    %147 = memref.load %arg4[%c0_59, %c6_60] : memref<2x8xf32, #tpu.memory_space<smem>>
    %c1_61 = arith.constant 1 : index
    %c6_62 = arith.constant 6 : index
    %148 = memref.load %arg4[%c1_61, %c6_62] : memref<2x8xf32, #tpu.memory_space<smem>>
    %149 = vector.broadcast %147 : f32 to vector<8x128xf32>
    %150 = vector.broadcast %148 : f32 to vector<8x128xf32>
    %151 = arith.select %5, %149, %150 : vector<8x128xi1>, vector<8x128xf32>
    %152 = arith.mulf %151, %146 : vector<8x128xf32>
    %153 = arith.addf %135, %152 : vector<8x128xf32>
    %c7 = arith.constant 7 : index
    %c0_63 = arith.constant 0 : index
    %154 = memref.load %arg2[%c7, %c0_63] : memref<8x2xf32, #tpu.memory_space<smem>>
    %155 = vector.broadcast %154 : f32 to vector<8x128xf32>
    %156 = arith.mulf %21, %155 : vector<8x128xf32>
    %c7_64 = arith.constant 7 : index
    %c1_65 = arith.constant 1 : index
    %157 = memref.load %arg2[%c7_64, %c1_65] : memref<8x2xf32, #tpu.memory_space<smem>>
    %158 = vector.broadcast %157 : f32 to vector<8x128xf32>
    %159 = arith.mulf %22, %158 : vector<8x128xf32>
    %c7_66 = arith.constant 7 : index
    %160 = memref.load %arg3[%c7_66] : memref<8xf32, #tpu.memory_space<smem>>
    %161 = vector.broadcast %160 : f32 to vector<8x128xf32>
    %162 = arith.addf %159, %161 : vector<8x128xf32>
    %163 = arith.addf %156, %162 : vector<8x128xf32>
    %164 = math.tanh %163 : vector<8x128xf32>
    %c0_67 = arith.constant 0 : index
    %c7_68 = arith.constant 7 : index
    %165 = memref.load %arg4[%c0_67, %c7_68] : memref<2x8xf32, #tpu.memory_space<smem>>
    %c1_69 = arith.constant 1 : index
    %c7_70 = arith.constant 7 : index
    %166 = memref.load %arg4[%c1_69, %c7_70] : memref<2x8xf32, #tpu.memory_space<smem>>
    %167 = vector.broadcast %165 : f32 to vector<8x128xf32>
    %168 = vector.broadcast %166 : f32 to vector<8x128xf32>
    %169 = arith.select %5, %167, %168 : vector<8x128xi1>, vector<8x128xf32>
    %170 = arith.mulf %169, %164 : vector<8x128xf32>
    %171 = arith.addf %153, %170 : vector<8x128xf32>
    %c0_71 = arith.constant 0 : index
    %c0_72 = arith.constant 0 : index
    %172 = vector.load %arg6[%c0_71, %c0_72] : memref<8x128xf32, #tpu.memory_space<vmem>>, vector<8x128xf32>
    tpu.vector_store %arg6[%c0_71, %c0_72], %171 {strides = array<i32>} : memref<8x128xf32, #tpu.memory_space<vmem>>, vector<8x128xf32>,
    return
  }
  func.func @transform_0(%arg0: i32) -> (i32, i32) {
    %c0_i32 = arith.constant 0 : i32
    %c0_i32_0 = arith.constant 0 : i32
    return %arg0, %c0_i32 : i32, i32
  }
  func.func @transform_1(%arg0: i32) -> (i32, i32) {
    %c0_i32 = arith.constant 0 : i32
    %c0_i32_0 = arith.constant 0 : i32
    %c0_i32_1 = arith.constant 0 : i32
    return %c0_i32, %c0_i32_0 : i32, i32
  }
  func.func @transform_2(%arg0: i32) -> i32 {
    %c0_i32 = arith.constant 0 : i32
    %c0_i32_0 = arith.constant 0 : i32
    return %c0_i32 : i32
  }
  func.func @transform_3(%arg0: i32) -> (i32, i32) {
    %c0_i32 = arith.constant 0 : i32
    %c0_i32_0 = arith.constant 0 : i32
    %c0_i32_1 = arith.constant 0 : i32
    return %c0_i32, %c0_i32_0 : i32, i32
  }
  func.func @transform_4(%arg0: i32) -> i32 {
    %c0_i32 = arith.constant 0 : i32
    %c0_i32_0 = arith.constant 0 : i32
    return %c0_i32 : i32
  }
  func.func @transform_5(%arg0: i32) -> (i32, i32) {
    %c0_i32 = arith.constant 0 : i32
    %c0_i32_0 = arith.constant 0 : i32
    return %arg0, %c0_i32 : i32, i32
  }
}

</mosaic_0001>

<bundles_post_ra>
// kernel: tpu_custom_call.1
= control target key start
LH: loop header
LB: loop body
LE: loop exit
PB: predicated region body
PF: predicated region fallthrough
CT: control target
= control target key end

     0   :  { %10 = vsyncpa [#allocation4], 0  ;;  %s643_s0 = inlined_call_operand.vmem [shape: f32[8,128], index: 0, kind: input, shape index: {}]   ;;  %s644_s1 = inlined_call_operand.vmem [shape: f32[8,2], index: 1, kind: input, shape index: {}]   ;;  %s645_s2 = inlined_call_operand.vmem [shape: f32[8], index: 2, kind: input, shape index: {}]   ;;  %s646_s3 = inlined_call_operand.vmem [shape: f32[2,8], index: 3, kind: input, shape index: {}]   ;;  %s647_s4 = inlined_call_operand.vmem [shape: f32[2], index: 4, kind: input, shape index: {}]   ;;  %s648_s5 = inlined_call_operand.hbm [shape: f32[8,128], index: 5, kind: output, shape index: {}]  }
   0x1   :  { %11 = vsyncpa [#allocation6], 0 }
   0x2   :  { %12 = vsyncpa [#allocation9], 0  ;;  %s32_s20 = sshll.u32 %s645_s2, 4  ;;  %s33_s20 = int_to_ptr.vmem [resolvable:$true] %s32_s20 }
   0x3   :  { %13 = vsyncpa [#allocation3], 0  ;;  %s22_s23 = sshll.u32 %s644_s1, 4  ;;  %s342_s24 = scalar_lea.vmem %s33_s20, 16  ;;  %s23_s23 = int_to_ptr.vmem [resolvable:$true] %s22_s23 }
   0x4   :  { %p343_p0 = scmp.ne.s32.totalorder %s33_s20, %s342_s24  ;;  %p347_p1 = scmp.lt.s32.totalorder %s33_s20, %s33_s20 }
   0x5   :  { %p348_p2 = scmp.lt.s32.totalorder %s342_s24, %s342_s24 }
   0x7   :  { %p349_p3 = por %p348_p2, %p347_p1 }
   0x9   :  { %p350_p4 = pnand %p349_p3, %p343_p0 }
   0xb   :  { %353 = shalt.err (!%p350_p4)
}
   0xc   :  { %s420_s25 = smov [#allocation5]   ;;  %s354_s26 = scalar_lea.vmem %s23_s23, 128 }
   0xd   :  { %35 = dma.vmem_to_smem %s33_s20, 16, %s420_s25, [#allocation6]  }
   0xe   :  { %p355_p5 = scmp.ne.s32.totalorder %s23_s23, %s354_s26  ;;  %p359_p6 = scmp.lt.s32.totalorder %s23_s23, %s23_s23 }
   0xf   :  { %p360_p7 = scmp.lt.s32.totalorder %s354_s26, %s354_s26 }
  0x11   :  { %p361_p8 = por %p360_p7, %p359_p6 }
  0x13   :  { %p362_p9 = pnand %p361_p8, %p355_p5 }
  0x15   :  { %365 = shalt.err (!%p362_p9)
}
  0x16   :  { %s421_s2 = smov [#allocation2]   ;;  %s42_s28 = sshll.u32 %s646_s3, 4  ;;  %s43_s28 = int_to_ptr.vmem [resolvable:$true] %s42_s28 }
  0x17   :  { %25 = dma.vmem_to_smem %s23_s23, 128, %s421_s2, [#allocation4]  }
  0x18   :  { %s52_s6 = sshll.u32 %s647_s4, 4  ;;  %s366_s7 = scalar_lea.vmem %s43_s28, 32  ;;  %s53_s6 = int_to_ptr.vmem [resolvable:$true] %s52_s6 }
  0x19   :  { %p367_p10 = scmp.ne.s32.totalorder %s43_s28, %s366_s7  ;;  %p371_p11 = scmp.lt.s32.totalorder %s43_s28, %s43_s28 }
  0x1a   :  { %p372_p12 = scmp.lt.s32.totalorder %s366_s7, %s366_s7 }
  0x1c   :  { %p373_p13 = por %p372_p12, %p371_p11 }
  0x1e   :  { %p374_p0 = pnand %p373_p13, %p367_p10 }
  0x20   :  { %377 = shalt.err (!%p374_p0)
}
  0x21   :  { %s422_s8 = smov [#allocation7]   ;;  %s378_s9 = scalar_lea.vmem %s53_s6, 16 }
  0x22   :  { %45 = dma.vmem_to_smem %s43_s28, 32, %s422_s8, [#allocation6]  }
  0x23   :  { %p379_p1 = scmp.ne.s32.totalorder %s53_s6, %s378_s9  ;;  %p383_p2 = scmp.lt.s32.totalorder %s53_s6, %s53_s6 }
  0x24   :  { %p384_p3 = scmp.lt.s32.totalorder %s378_s9, %s378_s9 }
  0x26   :  { %p385_p4 = por %p384_p3, %p383_p2 }
  0x28   :  { %p386_p5 = pnand %p385_p4, %p379_p1 }
  0x2a   :  { %389 = shalt.err (!%p386_p5)
}
  0x2b   :  { %s423_s3 = smov [#allocation8]  }
  0x2c   :  { %55 = dma.vmem_to_smem %s53_s6, 16, %s423_s3, [#allocation9]  }
  0x2d   :  { %412 = dma.done.wait [#allocation4], 128  }
  0x2e   :  { %413 = vsyncadd [#allocation4], 4294967168 }
  0x2f   :  { %414 = dma.done.wait [#allocation6], 48  }
  0x30   :  { %415 = vsyncadd [#allocation6], 4294967248 }
  0x31   :  { %416 = dma.done.wait [#allocation9], 16  }
  0x32   :  { %417 = vsyncadd [#allocation9], 4294967280 }
  0x33   :  { %68 = sfence }
  0x34   :  { %v70_v0 = vlaneseq  ;;  %s424_s4 = smov 1   ;;  %v425_v4 = vmov 0   ;;  %v473_v10 = vld [vmem:[%s643_s0] sm:$0xff]  ;;  %s426_s12 = smov 127  }
  0x35   :  { %s477_s0 = sld [smem:[#allocation2]]  ;;  %s479_s13 = sld [smem:[#allocation2 + $0x1]] }
  0x36   :  { %v71_v1 = vand.u32 127, %v70_v0  ;;  %s481_s14 = sld [smem:[#allocation2 + $0x80]]  ;;  %s485_s16 = sld [smem:[#allocation2 + $0x81]] }
  0x37   :  { %s483_s15 = sld [smem:[#allocation5]]  ;;  %s487_s17 = sld [smem:[#allocation5 + $0x1]] }
  0x38   :  { %78 = vrot.lane.b32.xlu0 %v71_v1, %s424_s4  ;;  %v277_v2 = vadd.s32 4294967295, %v71_v1  ;;  %s489_s18 = sld [smem:[#allocation2 + $0x100]]  ;;  %s491_s19 = sld [smem:[#allocation2 + $0x101]]  ;;  %v72_v24 = vand.u32 1, %v71_v1 }
  0x39   :  { %s493_s20 = sld [smem:[#allocation5 + $0x2]]  ;;  %s495_s21 = sld [smem:[#allocation2 + $0x180]] }
  0x3a   :  { %s497_s22 = sld [smem:[#allocation2 + $0x181]]  ;;  %s499_s23 = sld [smem:[#allocation5 + $0x3]]  ;;  %vm515_vm1 = vcmp.eq.s32.totalorder %v72_v24, 0 }
  0x3b   :  { %s501_s24 = sld [smem:[#allocation2 + $0x200]]  ;;  %s503_s25 = sld [smem:[#allocation2 + $0x201]]  ;;  %v116_v26 = vstv %s477_s0  ;;  %v119_v27 = vstv %s479_s13 }
  0x3c   :  { %s505_s26 = sld [smem:[#allocation5 + $0x4]]  ;;  %s507_s2 = sld [smem:[#allocation2 + $0x281]]  ;;  %v134_v28 = vstv %s481_s14  ;;  %v137_v30 = vstv %s485_s16 }
  0x3d   :  { %s509_s1 = sld [smem:[#allocation2 + $0x301]]  ;;  %s511_s28 = sld [smem:[#allocation5 + $0x5]]  ;;  %v122_v29 = vstv %s483_s15  ;;  %v140_v31 = vstv %s487_s17 }
  0x3e   :  { %s513_s29 = sld [smem:[#allocation2 + $0x381]]  ;;  %v152_v32 = vstv %s489_s18  ;;  %v155_v35 = vstv %s491_s19  ;;  %s532_s6 = sld [smem:[#allocation2 + $0x280]] }
  0x3f   :  { %v158_v36 = vstv %s493_s20  ;;  %v170_v37 = vstv %s495_s21  ;;  %s534_s7 = sld [smem:[#allocation5 + $0x6]]  ;;  %s546_s8 = sld [smem:[#allocation2 + $0x300]] }
  0x40   :  { %v173_v38 = vstv %s497_s22  ;;  %v176_v39 = vstv %s499_s23  ;;  %s548_s9 = sld [smem:[#allocation5 + $0x7]]  ;;  %s552_s3 = sld [smem:[#allocation2 + $0x380]] }
  0x41   :  { %v188_v40 = vstv %s501_s24  ;;  %v191_v41 = vstv %s503_s25  ;;  %s556_s10 = sld [smem:[#allocation7 + $0x80]]  ;;  %s563_s0 = sld [smem:[#allocation7 + $0x1]] }
  0x42   :  { %v194_v42 = vstv %s505_s26  ;;  %v209_v45 = vstv %s507_s2  ;;  %s558_s11 = sld [smem:[#allocation8]]  ;;  %s565_s13 = sld [smem:[#allocation7 + $0x81]] }
  0x43   :  { %v227_v46 = vstv %s509_s1  ;;  %v212_v51 = vstv %s511_s28  ;;  %s568_s14 = sld [smem:[#allocation7 + $0x2]]  ;;  %s574_s16 = sld [smem:[#allocation7 + $0x3]] }
  0x44   :  { %v245_v52 = vstv %s513_s29  ;;  %s570_s15 = sld [smem:[#allocation7 + $0x82]]  ;;  %s576_s17 = sld [smem:[#allocation7 + $0x83]] }
  0x45   :  { %s581_s18 = sld [smem:[#allocation7 + $0x4]]  ;;  %s589_s20 = sld [smem:[#allocation7 + $0x5]] }
  0x46   :  { %s583_s19 = sld [smem:[#allocation7 + $0x84]]  ;;  %s591_s21 = sld [smem:[#allocation7 + $0x85]] }
  0x47   :  { %s597_s22 = sld [smem:[#allocation7 + $0x6]]  ;;  %s607_s24 = sld [smem:[#allocation7 + $0x7]] }
  0x48   :  { %s599_s23 = sld [smem:[#allocation7 + $0x86]]  ;;  %s609_s25 = sld [smem:[#allocation7 + $0x87]] }
  0x49   :  { %s427_s26 = smov [#allocation10]  }
  0x4a   :  { %s266_s2 = sshll.u32 %s427_s26, 4  ;;  %s267_s2 = int_to_ptr.vmem [resolvable:$true] %s266_s2 }
  0x4b   :  { %s390_s1 = scalar_lea.vmem %s267_s2, 128  ;;  %p395_p8 = scmp.lt.s32.totalorder %s267_s2, %s267_s2 }
  0x4c   :  { %p391_p7 = scmp.ne.s32.totalorder %s267_s2, %s390_s1  ;;  %p396_p9 = scmp.lt.s32.totalorder %s390_s1, %s390_s1 }
  0x4e   :  { %p397_p10 = por %p396_p9, %p395_p8 }
  0x50   :  { %p398_p11 = pnand %p397_p10, %p391_p7 }
  0xaa   :  { %v79_v3 = vpop.permute.xlu0 %78 }
  0xab   :  { %vm81_vm0 = vcmp.eq.s32.totalorder %v79_v3, %v277_v2 }
  0xac   :  { %v82_v5 = vsel %vm81_vm0, 1, %v425_v4 }
  0xad   :  { %v84_v6 = vshrl.u32 %v82_v5, 16  ;;  %v83_v7 = vand.u32 65535, %v82_v5  ;;  %v206_v5 = vstv %s532_s6 }
  0xaf   :  { %v86_v8 = vcvt.s32.f32 %v84_v6  ;;  %v85_v9 = vcvt.s32.f32 %v83_v7  ;;  %v230_v7 = vstv %s534_s7 }
  0xb1   :  { %89 = vadd.xlane.f32.xlu0 %v86_v8  ;;  %87 = vadd.xlane.f32.xlu1 %v85_v9 }
  0xc2   :  { %74 = vrot.lane.b32.xlu1 %v473_v10, %s424_s4  ;;  %s554_s4 = sld [smem:[#allocation7]] }
  0xc6   :  { %76 = vrot.lane.b32.xlu1 %v473_v10, %s426_s12  ;;  %s560_s12 = sld [smem:[#allocation8 + $0x1]] }
 0x13e   :  { %v90_v11 = vpop.xlane.xlu0 %89  ;;  %v88_v12 = vpop.xlane.xlu1 %87 }
 0x13f   :  { %v92_v13 = vcvt.f32.s32 %v90_v11  ;;  %v91_v15 = vcvt.f32.s32 %v88_v12  ;;  %v224_v11 = vstv %s546_s8 }
 0x141   :  { %v93_v14 = vshll.u32 %v92_v13, 16  ;;  %v248_v13 = vstv %s548_s9 }
 0x142   :  { %v75_v23 = vpop.permute.xlu1 %74 }
 0x143   :  { %v94_v16 = vadd.s32 %v93_v14, %v91_v15 }
 0x145   :  { %v95_v17 = vrot.slane %v94_v16, 4 }
 0x146   :  { %v77_v33 = vpop.permute.xlu1 %76 }
 0x147   :  { %v96_v18 = vadd.s32 %v95_v17, %v94_v16  ;;  %v242_v17 = vstv %s552_s3 }
 0x149   :  { %v97_v19 = vrot.slane %v96_v18, 2 }
 0x14b   :  { %v98_v20 = vadd.s32 %v97_v19, %v96_v18 }
 0x14d   :  { %v99_v21 = vrot.slane %v98_v20, 1 }
 0x14f   :  { %v100_v22 = vadd.s32 %v99_v21, %v98_v20  ;;  %v128_v21 = vstv %s554_s4 }
 0x151   :  { %316 = vpush %v100_v22  ;;  %v129_v22 = vstv %s556_s10 }
 0x182   :  { %s317_s27 = spop %316 }
 0x183   :  { %p102_p6 = scmp.gt.s32.totalorder %s317_s27, 512 }
 0x185   :  { %s103_s30 = scalar_select %p102_p6, 1, 0 }
 0x187   :  { %v104_v34 = vstv %s103_s30 }
 0x188   :  { %vm105_vm2 = vcmp.eq.s32.totalorder %v104_v34, 1 }
 0x189   :  { %v106_v43 = vsel %vm105_vm2, %v75_v23, %v77_v33  ;;  %v107_v44 = vsel %vm105_vm2, %v77_v33, %v75_v23  ;;  %v165_v33 = vstv %s570_s15 }
 0x18a   :  { %v108_v47 = vsel %vm515_vm1, %v473_v10, %v106_v43  ;;  %v109_v48 = vsel %vm515_vm1, %v107_v44, %v473_v10 }
 0x18b   :  { %v120_v49 = vmul.f32 %v119_v27, %v109_v48  ;;  %v138_v50 = vmul.f32 %v137_v30, %v109_v48  ;;  %v117_v53 = vmul.f32 %v116_v26, %v108_v47  ;;  %v135_v54 = vmul.f32 %v134_v28, %v108_v47 }
 0x18c   :  { %v156_v55 = vmul.f32 %v155_v35, %v109_v48  ;;  %v174_v56 = vmul.f32 %v173_v38, %v109_v48  ;;  %v153_v59 = vmul.f32 %v152_v32, %v108_v47  ;;  %v192_v60 = vmul.f32 %v191_v41, %v109_v48 }
 0x18d   :  { %v123_v57 = vadd.f32 %v122_v29, %v120_v49  ;;  %v141_v58 = vadd.f32 %v140_v31, %v138_v50  ;;  %v171_v62 = vmul.f32 %v170_v37, %v108_v47  ;;  %v210_v0 = vmul.f32 %v209_v45, %v109_v48 }
 0x18e   :  { %v159_v61 = vadd.f32 %v158_v36, %v156_v55  ;;  %v177_v63 = vadd.f32 %v176_v39, %v174_v56  ;;  %v195_v3 = vadd.f32 %v194_v42, %v192_v60  ;;  %v228_v4 = vmul.f32 %v227_v46, %v109_v48 }
 0x18f   :  { %v124_v1 = vadd.f32 %v123_v57, %v117_v53  ;;  %v142_v2 = vadd.f32 %v141_v58, %v135_v54  ;;  %v189_v9 = vmul.f32 %v188_v40, %v108_v47  ;;  %v213_v10 = vadd.f32 %v212_v51, %v210_v0 }
 0x190   :  { %v160_v6 = vadd.f32 %v159_v61, %v153_v59  ;;  %v178_v8 = vadd.f32 %v177_v63, %v171_v62  ;;  %v246_v12 = vmul.f32 %v245_v52, %v109_v48  ;;  %v207_v14 = vmul.f32 %v206_v5, %v108_v47 }
 0x191   :  { %326 = vtanh.f32 %v124_v1  ;;  %v196_v15 = vadd.f32 %v195_v3, %v189_v9  ;;  %v231_v16 = vadd.f32 %v230_v7, %v228_v4  ;;  %v225_v19 = vmul.f32 %v224_v11, %v108_v47 }
 0x192   :  { %328 = vtanh.f32 %v142_v2  ;;  %v214_v18 = vadd.f32 %v213_v10, %v207_v14  ;;  %v249_v20 = vadd.f32 %v248_v13, %v246_v12  ;;  %v243_v24 = vmul.f32 %v242_v17, %v108_v47 }
 0x193   :  { %330 = vtanh.f32 %v160_v6  ;;  %v232_v23 = vadd.f32 %v231_v16, %v225_v19  ;;  %v112_v26 = vstv %s558_s11  ;;  %v113_v27 = vstv %s560_s12 }
 0x194   :  { %332 = vtanh.f32 %v178_v8  ;;  %v146_v28 = vstv %s563_s0  ;;  %v147_v29 = vstv %s565_s13  ;;  %v130_v30 = vsel %vm515_vm1, %v128_v21, %v129_v22 }
 0x195   :  { %334 = vtanh.f32 %v196_v15  ;;  %v250_v31 = vadd.f32 %v249_v20, %v243_v24  ;;  %v164_v32 = vstv %s568_s14  ;;  %v114_v35 = vsel %vm515_vm1, %v112_v26, %v113_v27 }
 0x196   :  { %336 = vtanh.f32 %v214_v18  ;;  %v148_v36 = vsel %vm515_vm1, %v146_v28, %v147_v29  ;;  %v182_v39 = vstv %s574_s16  ;;  %v183_v40 = vstv %s576_s17 }
 0x197   :  { %338 = vtanh.f32 %v232_v23  ;;  %v166_v42 = vsel %vm515_vm1, %v164_v32, %v165_v33  ;;  %v200_v45 = vstv %s581_s18  ;;  %v201_v46 = vstv %s583_s19 }
 0x198   :  { %340 = vtanh.f32 %v250_v31  ;;  %v184_v48 = vsel %vm515_vm1, %v182_v39, %v183_v40  ;;  %v218_v51 = vstv %s589_s20  ;;  %v219_v52 = vstv %s591_s21 }
 0x199   :  { %v202_v54 = vsel %vm515_vm1, %v200_v45, %v201_v46  ;;  %v236_v57 = vstv %s597_s22  ;;  %v237_v58 = vstv %s599_s23  ;;  %v220_v60 = vsel %vm515_vm1, %v218_v51, %v219_v52 }
 0x19a   :  { %v254_v63 = vstv %s607_s24  ;;  %v255_v0 = vstv %s609_s25  ;;  %v238_v2 = vsel %vm515_vm1, %v236_v57, %v237_v58 }
 0x19b   :  { %v327_v34 = vpop.eup %326  ;;  %v256_v6 = vsel %vm515_vm1, %v254_v63, %v255_v0 }
 0x19c   :  { %v329_v37 = vpop.eup %328  ;;  %v131_v38 = vmul.f32 %v327_v34, %v130_v30 }
 0x19d   :  { %v331_v41 = vpop.eup %330  ;;  %v149_v44 = vmul.f32 %v329_v37, %v148_v36 }
 0x19e   :  { %v132_v43 = vadd.f32 %v131_v38, %v114_v35  ;;  %v333_v47 = vpop.eup %332  ;;  %v167_v50 = vmul.f32 %v331_v41, %v166_v42 }
 0x19f   :  { %v335_v53 = vpop.eup %334  ;;  %v185_v56 = vmul.f32 %v333_v47, %v184_v48 }
 0x1a0   :  { %v150_v49 = vadd.f32 %v149_v44, %v132_v43  ;;  %v337_v59 = vpop.eup %336  ;;  %v203_v62 = vmul.f32 %v335_v53, %v202_v54 }
 0x1a1   :  { %v339_v1 = vpop.eup %338  ;;  %v221_v4 = vmul.f32 %v337_v59, %v220_v60 }
 0x1a2   :  { %v168_v55 = vadd.f32 %v167_v50, %v150_v49  ;;  %v341_v5 = vpop.eup %340  ;;  %v239_v8 = vmul.f32 %v339_v1, %v238_v2 }
 0x1a3   :  { %v257_v10 = vmul.f32 %v341_v5, %v256_v6 }
 0x1a4   :  { %v186_v61 = vadd.f32 %v185_v56, %v168_v55 }
 0x1a6   :  { %v204_v3 = vadd.f32 %v203_v62, %v186_v61 }
 0x1a8   :  { %v222_v7 = vadd.f32 %v221_v4, %v204_v3 }
 0x1aa   :  { %v240_v9 = vadd.f32 %v239_v8, %v222_v7 }
 0x1ac   :  { %v258_v11 = vadd.f32 %v257_v10, %v240_v9 }
 0x1ae   :  { %259 = vst [vmem:[#allocation10] sm:$0xff] %v258_v11 }
 0x1af   :  { %401 = shalt.err (!%p398_p11)
}
 0x1b0   :  { %s402_s29 = scalar_lea.hbm %s648_s5, 128 }
 0x1b1   :  { %p403_p12 = scmp.ne.s32.totalorder %s648_s5, %s402_s29  ;;  %p406_p13 = scmp.lt.u32.totalorder %s402_s29, %s648_s5 }
 0x1b3   :  { %p408_p0 = pnand %p406_p13, %p403_p12 }
 0x1b5   :  { %411 = shalt.err (!%p408_p0)
}
 0x1b6   :  { %269 = dma.vmem_to_hbm [thread:$0]  %s267_s2, 128, %s648_s5, [#allocation3]  }
 0x1b7   :  { %418 = dma.done.wait [#allocation3], 128  }
 0x1b8   :  { %419 = vsyncadd [#allocation3], 4294967168 }
 0x1b9   :  { %273 = vsyncpa [#allocation3], 1 }
 0x1ba   :  { %274 = vsyncpa [#allocation4], 1 }
 0x1bb   :  { %275 = vsyncpa [#allocation6], 1 }
 0x1bc   :  { %276 = vsyncpa [#allocation9], 1 }

</bundles_post_ra>
